<compile_context>
chip_gen: v7x
topology: tpu7x:2x2x1
jax: 0.10.0
libtpu: 0.0.40
codegen_flags: <defaults>
</compile_context>

<pallas_src>
import functools

import jax
import jax.numpy as jnp
from jax import lax
from jax.experimental import pallas as pl
from jax.experimental.pallas import tpu as pltpu

EPS = 5.960464477539063e-08


def _round_up(v, m):
    return (v + m - 1) // m * m


def _bandsplit_kernel(x_ref, g_ref, w_ref, b_ref, o_ref, *, band_bounds, dim):
    # x_ref : (TN, F)   g_ref : (1, F)   w_ref : (F, ODP)   b_ref : (1, ODP)
    # o_ref : (TN, ODP)
    x = x_ref[...].astype(jnp.float32)
    tn = x.shape[0]
    odp = w_ref.shape[1]

    # --- per-band inverse L2 norm: static lane-slice reductions (VPU/XLU),
    # kept off the MXU so they overlap with the matmul below. ---
    xx = x * x
    inv_cols = []
    for lo, hi in band_bounds:
        ssq = jnp.sum(xx[:, lo:hi], axis=-1, keepdims=True)            # (TN, 1)
        # rsqrt(max(ssq, eps^2)) == 1 / max(l2, eps)  (sqrt monotone); EUP op.
        inv_cols.append(lax.rsqrt(jnp.maximum(ssq, jnp.float32(EPS * EPS))))

    # Broadcast each band's scale onto its dim-wide output column block.
    pieces = [jnp.broadcast_to(c, (tn, dim)) for c in inv_cols]
    pad = odp - dim * len(band_bounds)
    if pad:
        # Padding columns of W_bd / bias are zero, so any finite scale keeps them 0.
        pieces.append(jnp.ones((tn, pad), jnp.float32))
    scale = jnp.concatenate(pieces, axis=-1)                            # (TN, ODP)

    # --- main matmul: native bf16 MXU pass, f32 accumulation. ---
    xg = (x * g_ref[...].astype(jnp.float32)).astype(w_ref.dtype)       # (TN, F)
    y = jnp.dot(xg, w_ref[...], preferred_element_type=jnp.float32)     # (TN, ODP)

    # Rescale the bias-free accumulator, then add the bias (zero-padded rows
    # have y == 0, so the large-but-finite 1/eps scale is harmless).
    o_ref[...] = (y * scale + b_ref[...].astype(jnp.float32)).astype(o_ref.dtype)


def prepare_band_split(params, dim_inputs, dim, weight_dtype=jnp.bfloat16):
    """Static per-model prep (call ONCE, not per forward): fold the CustomNorm
    scale sqrt(dim_in) into gamma, fuse the per-band Linears into one
    block-diagonal weight (bf16 -> single-pass MXU), and pad the output
    columns up to a multiple of 128 so stores are lane-dense."""
    nb = len(dim_inputs)
    f_total = sum(dim_inputs)
    od = nb * dim
    odp = _round_up(od, 128)

    g = jnp.zeros((1, f_total), jnp.float32)
    w_bd = jnp.zeros((f_total, odp), weight_dtype)
    b = jnp.zeros((1, odp), jnp.float32)

    off = 0
    for i, din in enumerate(dim_inputs):
        gamma, w, bias = params[i]
        g = g.at[0, off:off + din].set(
            gamma.astype(jnp.float32) * jnp.sqrt(jnp.float32(din)))
        w_bd = w_bd.at[off:off + din, i * dim:(i + 1) * dim].set(
            w.astype(weight_dtype))
        b = b.at[0, i * dim:(i + 1) * dim].set(bias.astype(jnp.float32))
        off += din

    return g, w_bd, b


def _plan_tiling(n_rows, f_total, odp, x_bytes, w_bytes, out_bytes,
                 max_rows=1024, vmem_budget_bytes=20 * 1024 * 1024):
    """Pick the row tile TN (multiple of 8) and the vmem_limit_bytes to request.

    Budget is kept under v5e's 16 MiB scoped default (+headroom via the
    explicit vmem_limit) and far under v7x's 64 MiB physical VMEM."""
    fp = _round_up(f_total, 128)
    f8 = _round_up(f_total, 8)
    # Resident constants (W_bd, g, bias). Requested single-buffered via
    # pl.Buffered(1); counted x2 anyway as headroom in case that is ignored.
    fixed = 2 * (f8 * odp * w_bytes + 8 * fp * 4 + 8 * odp * 4)
    # Per row: double-buffered x / out tiles + ~4 f32-wide temporaries.
    per_row = 2 * fp * x_bytes + 2 * odp * out_bytes + 4 * 4 * max(fp, odp)
    tn = (vmem_budget_bytes - fixed) // per_row
    tn = max(8, min(max_rows, (tn // 8) * 8))

    # v7x megacore: give the "parallel" row axis >= 2 grid steps when there is
    # enough work, and pick TN so the round_up(N, TN) padding is minimal.
    min_steps = 2 if n_rows >= 16 else 1
    steps = max(min_steps, pl.cdiv(n_rows, tn))
    tn = min(tn, _round_up(pl.cdiv(n_rows, steps), 8))

    planned = fixed + tn * per_row
    vmem_limit = int(min(max(planned + (2 << 20), 16 << 20), 48 << 20))
    return tn, vmem_limit


def _const_spec(shape):
    """Resident (constant index map) operand: single-buffered if supported."""
    try:
        return pl.BlockSpec(shape, lambda i: (0, 0), pipeline_mode=pl.Buffered(1))
    except (TypeError, AttributeError):
        return pl.BlockSpec(shape, lambda i: (0, 0))


def band_split_pallas(x, fused, dim_inputs, dim, *, max_rows=1024):
    """x: (B, T, sum(dim_inputs)) -> (B, T, num_bands, dim)."""
    g, w_bd, b = fused
    B, T, F = x.shape
    assert F == sum(dim_inputs)
    nb = len(dim_inputs)
    OD = nb * dim
    ODP = w_bd.shape[1]
    N = B * T

    band_bounds, off = [], 0
    for din in dim_inputs:
        band_bounds.append((off, off + din))
        off += din
    band_bounds = tuple(band_bounds)

    x2 = x.reshape(N, F)
    TN, vmem_limit = _plan_tiling(N, F, ODP, x.dtype.itemsize,
                                  w_bd.dtype.itemsize, x.dtype.itemsize,
                                  max_rows=max_rows)
    Np = _round_up(N, TN)
    if Np != N:
        # Zero rows -> y == bias only (finite); sliced off below.
        x2 = jnp.pad(x2, ((0, Np - N), (0, 0)))

    cost = pl.CostEstimate(
        flops=2 * Np * F * ODP + 3 * Np * F + 3 * Np * ODP,
        transcendentals=Np * nb,
        bytes_accessed=(Np * F + Np * ODP) * x.dtype.itemsize
        + F * ODP * w_bd.dtype.itemsize + 4 * (F + 2 * ODP),
    )

    kernel = functools.partial(_bandsplit_kernel, band_bounds=band_bounds,
                               dim=dim)

    out = pl.pallas_call(
        kernel,
        out_shape=jax.ShapeDtypeStruct((Np, ODP), x.dtype),
        grid_spec=pltpu.PrefetchScalarGridSpec(
            num_scalar_prefetch=0,
            grid=(Np // TN,),
            in_specs=[
                pl.BlockSpec((TN, F), lambda i: (i, 0)),   # x row tile
                _const_spec((1, F)),                       # sqrt(dim_in)*gamma
                _const_spec((F, ODP)),                     # block-diagonal W (bf16)
                _const_spec((1, ODP)),                     # bias (padded)
            ],
            out_specs=pl.BlockSpec((TN, ODP), lambda i: (i, 0)),
        ),
        compiler_params=pltpu.CompilerParams(
            dimension_semantics=("parallel",),
            vmem_limit_bytes=vmem_limit,
        ),
        cost_estimate=cost,
    )(x2, g, w_bd, b)

    return out[:N, :OD].reshape(B, T, nb, dim)


def band_split_ref(x, params, dim_inputs, dim):
    """Pure-JAX f32 reference matching the PyTorch forward."""
    outs = []
    off = 0
    for din, (gamma, w, bias) in zip(dim_inputs, params):
        xb = x[..., off:off + din].astype(jnp.float32)
        off += din
        l2 = jnp.sqrt(jnp.sum(xb * xb, axis=-1, keepdims=True))
        denom = jnp.maximum(l2, jnp.float32(EPS))
        xn = xb / denom * jnp.sqrt(jnp.float32(din)) * gamma
        outs.append(jnp.dot(xn, w, precision=lax.Precision.HIGHEST) + bias)
    return jnp.stack(outs, axis=-2)


if __name__ == "__main__":
    # Small shapes consistent with BandSplit: x is (batch, seq, sum(dim_inputs)).
    batch, seq = 2, 8
    dim = 32
    dim_inputs = (6, 10, 16)  # sum = 32

    key = jax.random.PRNGKey(0)
    kx, *kp = jax.random.split(key, 1 + 2 * len(dim_inputs))
    x = jax.random.normal(kx, (batch, seq, sum(dim_inputs)), dtype=jnp.float32)

    # Deterministic params: gamma=ones (CustomNorm init), Linear W/b random.
    params = []
    for i, din in enumerate(dim_inputs):
        gamma = jnp.ones((din,), jnp.float32)
        w = jax.random.normal(kp[2 * i], (din, dim), jnp.float32) * 0.05
        b = jax.random.normal(kp[2 * i + 1], (dim,), jnp.float32) * 0.01
        params.append((gamma, w, b))

    # Static weight fusion hoisted out of the per-call path (done once).
    fused = prepare_band_split(params, dim_inputs, dim)  # bf16 W_bd

    run = jax.jit(functools.partial(band_split_pallas,
                                    dim_inputs=dim_inputs, dim=dim))
    out = run(x, fused)
    jax.block_until_ready(out)

    ref = band_split_ref(x, params, dim_inputs, dim)
    assert out.shape == (batch, seq, len(dim_inputs), dim), out.shape
    # bf16 block-diagonal weights (native single-pass MXU path) -> looser
    # tolerance than the f32 HIGHEST reference.
    max_err = float(jnp.max(jnp.abs(out - ref)))
    assert jnp.allclose(out, ref, atol=1e-2, rtol=1e-2), max_err

    print("KERNEL_OK")
</pallas_src>

<mosaic_0001>
module attributes {stable_mosaic.version = 11 : i64} {
  func.func @_bandsplit_kernel(%arg0: i32, %arg1: memref<8x32xf32, #tpu.memory_space<vmem>>, %arg2: memref<1x32xf32, #tpu.memory_space<vmem>>, %arg3: memref<32x128xbf16, #tpu.memory_space<vmem>>, %arg4: memref<1x128xf32, #tpu.memory_space<vmem>>, %arg5: memref<8x128xf32, #tpu.memory_space<vmem>>) attributes {dimension_semantics = [#tpu.dimension_semantics<parallel>], iteration_bounds = array<i64: 2>, scalar_prefetch = 0 : i64, scratch_operands = 0 : i64, tpu.core_type = #tpu.core_type<tc>, window_params = [{transform_indices = @transform_0, window_bounds = array<i64: 8, 32>}, {pipeline_mode = #tpu.pipeline_mode<synchronous>, transform_indices = @transform_1, window_bounds = array<i64: 1, 32>}, {pipeline_mode = #tpu.pipeline_mode<synchronous>, transform_indices = @transform_2, window_bounds = array<i64: 32, 128>}, {pipeline_mode = #tpu.pipeline_mode<synchronous>, transform_indices = @transform_3, window_bounds = array<i64: 1, 128>}, {transform_indices = @transform_4, window_bounds = array<i64: 8, 128>}]} {
    %c0 = arith.constant 0 : index
    %c0_0 = arith.constant 0 : index
    %0 = vector.load %arg1[%c0, %c0_0] : memref<8x32xf32, #tpu.memory_space<vmem>>, vector<8x32xf32>
    %1 = arith.mulf %0, %0 : vector<8x32xf32>
    %2 = vector.extract_strided_slice %1 {offsets = [0, 0], sizes = [8, 6], strides = [1, 1]} : vector<8x32xf32> to vector<8x6xf32>
    %cst = arith.constant dense<0.000000e+00> : vector<8xf32>
    %3 = vector.multi_reduction <add>, %2, %cst [1] : vector<8x6xf32> to vector<8xf32>
    %4 = vector.shape_cast %3 : vector<8xf32> to vector<8x1xf32>
    %cst_1 = arith.constant 3.55271368E-15 : f32
    %5 = vector.broadcast %cst_1 : f32 to vector<8x1xf32>
    %6 = arith.maximumf %4, %5 : vector<8x1xf32>
    %7 = math.rsqrt %6 : vector<8x1xf32>
    %8 = vector.extract_strided_slice %1 {offsets = [0, 6], sizes = [8, 10], strides = [1, 1]} : vector<8x32xf32> to vector<8x10xf32>
    %cst_2 = arith.constant dense<0.000000e+00> : vector<8xf32>
    %9 = vector.multi_reduction <add>, %8, %cst_2 [1] : vector<8x10xf32> to vector<8xf32>
    %10 = vector.shape_cast %9 : vector<8xf32> to vector<8x1xf32>
    %cst_3 = arith.constant 3.55271368E-15 : f32
    %11 = vector.broadcast %cst_3 : f32 to vector<8x1xf32>
    %12 = arith.maximumf %10, %11 : vector<8x1xf32>
    %13 = math.rsqrt %12 : vector<8x1xf32>
    %14 = vector.extract_strided_slice %1 {offsets = [0, 16], sizes = [8, 16], strides = [1, 1]} : vector<8x32xf32> to vector<8x16xf32>
    %cst_4 = arith.constant dense<0.000000e+00> : vector<8xf32>
    %15 = vector.multi_reduction <add>, %14, %cst_4 [1] : vector<8x16xf32> to vector<8xf32>
    %16 = vector.shape_cast %15 : vector<8xf32> to vector<8x1xf32>
    %cst_5 = arith.constant 3.55271368E-15 : f32
    %17 = vector.broadcast %cst_5 : f32 to vector<8x1xf32>
    %18 = arith.maximumf %16, %17 : vector<8x1xf32>
    %19 = math.rsqrt %18 : vector<8x1xf32>
    %20 = vector.shape_cast %7 : vector<8x1xf32> to vector<8x1xf32>
    %21 = vector.broadcast %20 : vector<8x1xf32> to vector<8x32xf32>
    %22 = vector.shape_cast %13 : vector<8x1xf32> to vector<8x1xf32>
    %23 = vector.broadcast %22 : vector<8x1xf32> to vector<8x32xf32>
    %24 = vector.shape_cast %19 : vector<8x1xf32> to vector<8x1xf32>
    %25 = vector.broadcast %24 : vector<8x1xf32> to vector<8x32xf32>
    %cst_6 = arith.constant 1.000000e+00 : f32
    %26 = vector.broadcast %cst_6 : f32 to vector<8x32xf32>
    %27 = tpu.concatenate %21, %23, %25, %26 in 1 : vector<8x32xf32>, vector<8x32xf32>, vector<8x32xf32>, vector<8x32xf32> -> vector<8x128xf32>
    %c0_7 = arith.constant 0 : index
    %c0_8 = arith.constant 0 : index
    %28 = vector.load %arg2[%c0_7, %c0_8] : memref<1x32xf32, #tpu.memory_space<vmem>>, vector<1x32xf32>
    %29 = vector.broadcast %28 : vector<1x32xf32> to vector<8x32xf32>
    %30 = arith.mulf %0, %29 : vector<8x32xf32>
    %31 = arith.truncf %30 : vector<8x32xf32> to vector<8x32xbf16>
    %c0_9 = arith.constant 0 : index
    %c0_10 = arith.constant 0 : index
    %32 = vector.load %arg3[%c0_9, %c0_10] : memref<32x128xbf16, #tpu.memory_space<vmem>>, vector<32x128xbf16>
    %cst_11 = arith.constant dense<0.000000e+00> : vector<8x128xf32>
    %33 = tpu.matmul %31, %32, %cst_11 {dimension_numbers = #tpu.dot_dimension_numbers<[1], [0], [0], [1], [0, 0, 1, 1], [], []>} : vector<8x32xbf16>, vector<32x128xbf16>, vector<8x128xf32> -> vector<8x128xf32>
    %34 = arith.mulf %33, %27 : vector<8x128xf32>
    %c0_12 = arith.constant 0 : index
    %c0_13 = arith.constant 0 : index
    %35 = vector.load %arg4[%c0_12, %c0_13] : memref<1x128xf32, #tpu.memory_space<vmem>>, vector<1x128xf32>
    %36 = vector.broadcast %35 : vector<1x128xf32> to vector<8x128xf32>
    %37 = arith.addf %34, %36 : vector<8x128xf32>
    %c0_14 = arith.constant 0 : index
    %c0_15 = arith.constant 0 : index
    %38 = vector.load %arg5[%c0_14, %c0_15] : memref<8x128xf32, #tpu.memory_space<vmem>>, vector<8x128xf32>
    tpu.vector_store %arg5[%c0_14, %c0_15], %37 {strides = array<i32>} : memref<8x128xf32, #tpu.memory_space<vmem>>, vector<8x128xf32>,
    return
  }
  func.func @transform_0(%arg0: i32) -> (i32, i32) {
    %c0_i32 = arith.constant 0 : i32
    %c0_i32_0 = arith.constant 0 : i32
    return %arg0, %c0_i32 : i32, i32
  }
  func.func @transform_1(%arg0: i32) -> (i32, i32) {
    %c0_i32 = arith.constant 0 : i32
    %c0_i32_0 = arith.constant 0 : i32
    %c0_i32_1 = arith.constant 0 : i32
    return %c0_i32, %c0_i32_0 : i32, i32
  }
  func.func @transform_2(%arg0: i32) -> (i32, i32) {
    %c0_i32 = arith.constant 0 : i32
    %c0_i32_0 = arith.constant 0 : i32
    %c0_i32_1 = arith.constant 0 : i32
    return %c0_i32, %c0_i32_0 : i32, i32
  }
  func.func @transform_3(%arg0: i32) -> (i32, i32) {
    %c0_i32 = arith.constant 0 : i32
    %c0_i32_0 = arith.constant 0 : i32
    %c0_i32_1 = arith.constant 0 : i32
    return %c0_i32, %c0_i32_0 : i32, i32
  }
  func.func @transform_4(%arg0: i32) -> (i32, i32) {
    %c0_i32 = arith.constant 0 : i32
    %c0_i32_0 = arith.constant 0 : i32
    return %arg0, %c0_i32 : i32, i32
  }
}

</mosaic_0001>

<bundles_post_ra>
// kernel: band_split_pallas.1
= control target key start
LH: loop header
LB: loop body
LE: loop exit
PB: predicated region body
PF: predicated region fallthrough
CT: control target
= control target key end

     0   :  { %9 = vsyncpa [#allocation3], 0  ;;  %s785_s0 = inlined_call_operand.hbm [shape: f32[16,32], index: 0, kind: input, shape index: {}]   ;;  %s786_s1 = inlined_call_operand.vmem [shape: f32[1,32], index: 1, kind: input, shape index: {}]   ;;  %s787_s2 = inlined_call_operand.hbm [shape: bf16[32,128], index: 2, kind: input, shape index: {}]   ;;  %s788_s3 = inlined_call_operand.vmem [shape: f32[1,128], index: 3, kind: input, shape index: {}]   ;;  %s789_s4 = inlined_call_operand.vmem [shape: f32[16,128], index: 4, kind: output, shape index: {}]  }
   0x1   :  { %11 = vsyncpa [#allocation3 + $0x1], 0 }
   0x2   :  { %12 = vsyncpa [#allocation5], 0  ;;  %s638_s15 = smov 0   ;;  %s640_s16 = smov 0  }
   0x3   :  { %s642_s17 = smov 0   ;;  %s644_s18 = smov 0  }
   0x4 LB: > { %s657_s19 = sadd.s32 4294967295, %s603_s18   ;;  %p38_p0 = scmp.ne.s32.totalorder %s595_s16, %s591_s15  ;;  %s603_s18 = sphi %s644_s18, %s804_s18   ;;  %s599_s17 = sphi %s642_s17, %s803_s17   ;;  %s595_s16 = sphi %s640_s16, %s802_s16   ;;  %s591_s15 = sphi %s638_s15, %s801_s15  }
   0x5   : > { %p790_p1 = scmp.eq.s32.totalorder %s657_s19, 0  ;;  %p416_p2 = scmp.ge.s32.totalorder %s603_s18, 1 }
   0x6   : > { %p138_p3 = scmp.lt.s32.totalorder %s603_s18, 3  ;;  %s605_s22 = smov [#allocation4]  }
   0x7   : > { %p665_p4 = por %p790_p1, %p38_p0  ;;  %s153_s23 = sshll.u32 %s605_s22, 4  ;;  %s154_s23 = int_to_ptr.vmem [resolvable:$true] %s153_s23 }
   0x8   : > { %p669_p5 = pnand %p416_p2, %p138_p3  ;;  %s682_s25 = sadd.s32 1, %s603_s18  }
   0x9   : > { %s793_s20 = scalar_select %p665_p4, 1, 0 }
   0xa   : > { %s794_s21 = scalar_select %p669_p5, 1, 0 }
   0xb   : > { %p449_p6 = pneg %p669_p5  ;;  %s25_s26 = sadd.s32 1, %s599_s17 }
   0xc   : > { %s22_s27 = ssub.s32 %s603_s18, %s682_s25  ;;  %s507_s30 = scalar_lea.hbm %s787_s2, 256 }
   0xd   : > { %p677_p7 = pnand %p449_p6, %p790_p1  ;;  %p508_p8 = scmp.ne.s32.totalorder %s787_s2, %s507_s30 }
   0xe   : > { %p514_p12 = scmp.lt.u32.totalorder %s507_s30, %s787_s2 }
   0xf   : > { %p509_p9 = pneg %p677_p7 }
  0x11   : > { %p510_p10 = pnand %p509_p9, %p508_p8 }
  0x13   : > { %p511_p11 = pneg %p510_p10 }
  0x15   : > { %p516_p13 = pnand %p514_p12, %p511_p11 }
  0x17   : > { %519 = shalt.err (!%p516_p13)
}
  0x18   : > { %s520_s9 = scalar_lea.vmem %s154_s23, 256  ;;  %p528_p6 = scmp.lt.s32.totalorder %s154_s23, %s154_s23 }
  0x19   : > { %p521_p0 = scmp.ne.s32.totalorder %s154_s23, %s520_s9  ;;  %p529_p1 = scmp.lt.s32.totalorder %s520_s9, %s520_s9 }
  0x1b   : > { %p523_p2 = pnand %p521_p0, %p509_p9  ;;  %p530_p4 = por %p529_p1, %p528_p6 }
  0x1d   : > { %p524_p3 = pneg %p523_p2 }
  0x1f   : > { %p531_p5 = pnand %p530_p4, %p524_p3 }
  0x21   : > { %534 = shalt.err (!%p531_p5)
}
  0x22   : > { %s606_s10 = smov 64   ;;  %s607_s11 = smov 4  }
  0x23   : > { %452 = dma.hbm_to_vmem [thread:$0]  (!%p677_p7), %s787_s2, 256, %s154_s23, [#allocation5], %s606_s10, %s606_s10, %s607_s11  }
  0x24   : > { %p23_p8 = scmp.eq.s32.totalorder %s22_s27, 0  ;;  %p32_p9 = scmp.ne.s32.totalorder %s599_s17, %s595_s16 }
  0x25   : > { %p33_p1 = scmp.eq.s32.totalorder %s603_s18, 0  ;;  %p458_p4 = scmp.lt.s32.totalorder %s603_s18, 2 }
  0x26   : > { %s708_s14 = scalar_select %p23_p8, %s599_s17, %s25_s26  }
  0x27   : > { %p34_p5 = por %p33_p1, %p32_p9  ;;  %s170_s15 = sand.u32 1, %s599_s17  }
  0x28   : > { %s419_s22 = sshll.u32 %s170_s15, 3  ;;  %s420_s28 = sshll.u32 %s603_s18, 7 }
  0x29   : > { %s715_s5 = scalar_lea.hbm %s785_s0, %s420_s28  ;;  %s174_s23 = scalar_lea.vmem [#allocation2], %s419_s22 }
  0x2a   : > { %s181_s24 = sshll.u32 %s174_s23, 4  ;;  %p719_p7 = pnand %p458_p4, %p34_p5  ;;  %s717_s24 = int_to_ptr.vmem [resolvable:$true] %s181_s24 }
  0x2b   : > { %s171_s18 = scalar_lea.sflag [#allocation3], %s170_s15  ;;  %s535_s27 = scalar_lea.hbm %s715_s5, 128 }
  0x2c   : > { %p536_p10 = scmp.ne.s32.totalorder %s715_s5, %s535_s27  ;;  %p537_p11 = pneg %p719_p7 }
  0x2d   : > { %s540_s8 = scalar_lea.hbm %s785_s0, 256  ;;  %p541_p0 = scmp.lt.u32.totalorder %s715_s5, %s785_s0 }
  0x2e   : > { %p538_p12 = pnand %p537_p11, %p536_p10  ;;  %p542_p2 = scmp.lt.u32.totalorder %s540_s8, %s535_s27 }
  0x2f   : > { %p544_p6 = scmp.lt.u32.totalorder %s535_s27, %s715_s5 }
  0x30   : > { %p539_p13 = pneg %p538_p12  ;;  %p543_p3 = por %p542_p2, %p541_p0 }
  0x32   : > { %p545_p8 = por %p544_p6, %p543_p3 }
  0x34   : > { %p546_p9 = pnand %p545_p8, %p539_p13 }
  0x36   : > { %549 = shalt.err (!%p546_p9)
}
  0x37   : > { %s550_s11 = scalar_lea.vmem %s717_s24, 128  ;;  %s608_s12 = smov [#allocation2]  }
  0x38   : > { %p551_p1 = scmp.ne.s32.totalorder %s717_s24, %s550_s11  ;;  %s555_s13 = sshll.u32 %s608_s12, 4  ;;  %s556_s13 = int_to_ptr.vmem [resolvable:$false] %s555_s13 }
  0x39   : > { %s557_s15 = scalar_lea.vmem %s556_s13, 256  ;;  %p558_p10 = scmp.lt.s32.totalorder %s717_s24, %s556_s13 }
  0x3a   : > { %p553_p4 = pnand %p551_p1, %p537_p11  ;;  %p559_p12 = scmp.lt.s32.totalorder %s557_s15, %s550_s11 }
  0x3c   : > { %p554_p5 = pneg %p553_p4  ;;  %p560_p0 = por %p559_p12, %p558_p10 }
  0x3e   : > { %p561_p2 = pnand %p560_p0, %p554_p5 }
  0x40   : > { %564 = shalt.err (!%p561_p2)
}
  0x41   : > { %456 = dma.hbm_to_vmem [thread:$0]  (!%p719_p7), %s715_s5, 128, %s717_s24, %s171_s18  }
  0x42   : > { %p797_p13 = scmp.ne.s32.totalorder %s794_s21, 0 }
  0x43   : > { %s192_s22 = sand.u32 (!%p797_p13), 1, %s595_s16   ;;  %p798_p11 = scmp.ne.s32.totalorder (!%p797_p13), %s793_s20, 0 }
  0x44   : > { %190 = sbr.rel (%p797_p13) target bundleno = 364 (0x16c), region = 36  ;;  %s422_s28 = sshll.u32 (!%p797_p13), %s192_s22, 3 }
  0x45   : > { %s193_s29 = scalar_lea.sflag (!%p797_p13), [#allocation3], %s192_s22  ;;  %s196_s30 = scalar_lea.vmem (!%p797_p13), [#allocation2], %s422_s28 }
  0x4b   : > { %582 = dma.done.wait (%p798_p11), %s193_s29, 128  }
  0x4c   : > { %584 = vsyncadd (%p798_p11), %s193_s29, 4294967168  ;;  %p799_p3 = scmp.eq.s32.totalorder %s657_s19, 0 }
  0x4e   : > { %586 = dma.done.wait (%p799_p3), [#allocation5], 256   ;;  %p800_p6 = pmov %p799_p3 }
  0x4f   : > { %v609_v0 = vmov 0.0   ;;  %vm610_vm0 = vmmov 0   ;;  %v229_v1 = vld [vmem:[%s196_s30] sm:$0xff]  ;;  %vm231_vm1 = vcmask 48128   ;;  %v499_v4 = vld [vmem:[#allocation4] sm:$0xff]   ;;  %s611_s20 = smov 122  }
  0x50   : > { %588 = vsyncadd (%p800_p6), [#allocation5], 4294967040  ;;  %435 = vmatprep.subr.bf16.mxu0 %v609_v0  ;;  %439 = vmatprep.mubr.msk.bf16.mxu0 %vm610_vm0, %v609_v0  ;;  %v425_v2 = vld [vmem:[%s786_s1] ss:$0 sm:$0xff]  ;;  %v230_v3 = vmul.f32 %v229_v1, %v229_v1  ;;  %v500_v6 = vld [vmem:[#allocation4 + $0x8] sm:$0xff]   ;;  %s612_s23 = smov 112  }
  0x51   : > { %v269_v5 = vmul.f32 %v425_v2, %v229_v1  ;;  %436 = vmatpush3.bf16.msra.mxu0 %v499_v4  ;;  %vm256_vm2 = vcmask 261120   ;;  %vm241_vm3 = vcmask 80896   ;;  %vm250_vm4 = vcmask 130048   ;;  %p224_p7 = scmp.lt.s32.totalorder %s657_s19, 1  ;;  %v429_v29 = vld [vmem:[%s788_s3] ss:$0 sm:$0xff] }
  0x52   : > { %238 = vrot.lane.b32.xlu0 %v230_v3, %s611_s20  ;;  %v232_v7 = vsel %vm231_vm1, %v230_v3, 0.0  ;;  %437 = vmatprep.subr.bf16.mxu0 %v609_v0  ;;  %vm258_vm5 = vcmask 523264   ;;  %vm260_vm6 = vcmask 785408  }
  0x53   : > { %233 = vadd.xlane.f32.xlu1 %v232_v7  ;;  %v270_v8 = vpack.c.bf16 %v269_v5, %v269_v5  ;;  %s806_s19 = smov (!%p224_p7, %s657_s19), 1 }
  0x54   : > { %s424_s24 = sshll.u32 %s806_s19, 3 }
  0x55   : > { %438 = vmatpush3.bf16.msra.mxu0 %v500_v6  ;;  %s227_s7 = scalar_lea.vmem %s789_s4, %s424_s24 }
  0x56   : > { %247 = vrot.lane.b32.xlu0 %v230_v3, %s612_s23 }
  0x58   : > { %440 = vmatmul.mubr.msk.bf16.vlgmr.msra.gmra.mrb[0].mxu0 %vm256_vm2, %v270_v8 }
  0xc4   : > { %v239_v9 = vpop.permute.xlu0 %238 }
  0xc5   : > { %v242_v10 = vsel %vm241_vm3, %v239_v9, 0.0 }
  0xc6   : > { %243 = vadd.xlane.f32.xlu1 %v242_v10 }
  0xc8   : > { %v248_v11 = vpop.permute.xlu0 %247 }
  0xc9   : > { %v251_v12 = vsel %vm250_vm4, %v248_v11, 0.0 }
  0xca   : > { %252 = vadd.xlane.f32.xlu0 %v251_v12 }
  0xe0   : > { %v234_v17 = vpop.xlane.xlu1 %233 }
  0xe1   : > { %v235_v18 = vmax.f32 %v234_v17, 3.5527137e-15 }
  0xe3   : > { %501 = vrsqrt.f32 %v235_v18 }
  0xed   : > { %v502_v23 = vpop.eup %501 }
 0x12b   : > { %v324_v13 = vpop.f32.mrb[0].mxu0 }
 0x12c   : > { %v441_v14 = vpop.f32.mrb[1].mxu0 }
 0x12d   : > { %v327_v15 = vpop.f32.mrb[2].mxu0 }
 0x12e   : > { %v442_v16 = vpop.f32.mrb[3].mxu0 }
 0x153   : > { %v244_v19 = vpop.xlane.xlu1 %243 }
 0x154   : > { %v245_v20 = vmax.f32 %v244_v19, 3.5527137e-15 }
 0x156   : > { %503 = vrsqrt.f32 %v245_v20 }
 0x157   : > { %v253_v21 = vpop.xlane.xlu0 %252 }
 0x158   : > { %v254_v22 = vmax.f32 %v253_v21, 3.5527137e-15 }
 0x15a   : > { %505 = vrsqrt.f32 %v254_v22 }
 0x160   : > { %v504_v24 = vpop.eup %503 }
 0x161   : > { %v257_v26 = vsel %vm256_vm2, %v502_v23, %v504_v24 }
 0x164   : > { %v506_v25 = vpop.eup %505 }
 0x165   : > { %v259_v27 = vsel %vm258_vm5, %v257_v26, %v506_v25 }
 0x166   : > { %v261_v28 = vsel %vm260_vm6, %v259_v27, 1.0 }
 0x167   : > { %v330_v30 = vmul.f32 %v324_v13, %v261_v28 }
 0x169   : > { %v338_v31 = vadd.f32 %v429_v29, %v330_v30 }
 0x16b   : > { %339 = vst [vmem:[%s227_s7] sm:$0xff] %v338_v31 }
 0x16c PF: > { %p15_p8 = scmp.ge.s32.totalorder %s682_s25, 4   ;;  %s801_s15 = smov %s595_s16 }
 0x16d   : > { %s802_s16 = smov %s599_s17  ;;  %s803_s17 = smov %s708_s14 }
 0x16e   : > { %s804_s18 = smov %s682_s25  ;;  %17 = sbr.rel (!%p15_p8) target bundleno = 4 (0x4), region = 80 }
 0x175   :  { %359 = vsyncpa [#allocation3], 1 }
 0x176   :  { %361 = vsyncpa [#allocation3 + $0x1], 1 }
 0x177   :  { %362 = vsyncpa [#allocation5], 1 }

</bundles_post_ra>
